<compile_context>
chip_gen: v6e
topology: v6e:2x2x1
jax: 0.10.0
libtpu: 0.0.40
codegen_flags: <defaults>
</compile_context>

<pallas_src>
import functools

import jax
import jax.numpy as jnp
from jax.experimental import pallas as pl
from jax.experimental.pallas import tpu as pltpu

BN_EPS = 1e-5


# --------------------------------------------------------------------------- #
# Kernel
# --------------------------------------------------------------------------- #
def fcp_kernel(xT_ref, p_ref, o_ref, *, F, H, L, r_w2, r_wp, r_bias):
    """xT tile (F, tile_b) -> (Linear+BN folded -> ReLU) x2 -> Linear -> Softmax.

    All parameters live in one packed block `p_ref`; static ref slices are
    zero-cost views.  Batch stays on the 128-lane axis throughout.
    """
    x = xT_ref[...]                                   # (F, tile_b)

    w1 = p_ref[0:H, 0:F]                              # (H, F)  BN folded
    w2 = p_ref[r_w2:r_w2 + H, 0:H]                    # (H, H)  BN folded
    wp = p_ref[r_wp:r_wp + L, 0:H]                    # (L, H)
    c1 = p_ref[r_bias:r_bias + H, 0:1]                # (H, 1)  folded bias+shift
    c2 = p_ref[r_bias:r_bias + H, 1:2]                # (H, 1)
    bp = p_ref[r_bias:r_bias + L, 2:3]                # (L, 1)  projection bias

    # hidden layer 1: Linear (BN folded) -> Dropout(eval=id) -> ReLU
    h = jnp.dot(w1, x, preferred_element_type=jnp.float32) + c1
    h = jnp.maximum(h, 0.0)

    # hidden layer 2
    h = jnp.dot(w2, h, preferred_element_type=jnp.float32) + c2
    h = jnp.maximum(h, 0.0)

    # projection -> (L, tile_b)
    logits = jnp.dot(wp, h, preferred_element_type=jnp.float32) + bp

    # softmax over labels (sublane axis); divide -> reciprocal-multiply (exact)
    m = jnp.max(logits, axis=0, keepdims=True)
    e = jnp.exp(logits - m)
    inv = pl.reciprocal(jnp.sum(e, axis=0, keepdims=True), approx=False)
    o_ref[...] = (e * inv).astype(o_ref.dtype)


# --------------------------------------------------------------------------- #
# Parameter folding / packing
# --------------------------------------------------------------------------- #
def _round8(n):
    return ((n + 7) // 8) * 8


def fold_params(params):
    """Fold eval-mode BatchNorm (scale/shift) + Linear bias into the weights,
    transpose to (out, in), and pack everything into a single 2-D block with
    statically known row offsets (bias vectors stored as columns 0/1/2)."""
    w1, b1, s1, t1 = params["w1"], params["b1"], params["s1"], params["t1"]
    w2, b2, s2, t2 = params["w2"], params["b2"], params["s2"], params["t2"]
    wp, bp = params["wp"], params["bp"]

    F, H = w1.shape
    L = wp.shape[1]

    w1f = (w1 * s1).T                    # (H, F)  column-wise BN scale folded
    c1 = (b1 * s1 + t1).reshape(-1)      # (H,)
    w2f = (w2 * s2).T                    # (H, H)
    c2 = (b2 * s2 + t2).reshape(-1)      # (H,)
    wpT = wp.T                           # (L, H)
    bpv = bp.reshape(-1)                 # (L,)

    Hp, Lp = _round8(H), _round8(L)
    W = max(F, H)
    assert W >= 3, "bias-column packing needs at least 3 columns"
    r_w2 = Hp
    r_wp = 2 * Hp
    r_bias = 2 * Hp + Lp
    n_rows = r_bias + Hp

    P = jnp.zeros((n_rows, W), jnp.float32)
    P = P.at[0:H, :F].set(w1f)
    P = P.at[r_w2:r_w2 + H, :H].set(w2f)
    P = P.at[r_wp:r_wp + L, :H].set(wpT)
    P = P.at[r_bias:r_bias + H, 0].set(c1)
    P = P.at[r_bias:r_bias + H, 1].set(c2)
    P = P.at[r_bias:r_bias + L, 2].set(bpv)

    dims = dict(F=F, H=H, L=L, r_w2=r_w2, r_wp=r_wp, r_bias=r_bias)
    return P, dims


# --------------------------------------------------------------------------- #
# Wrapper
# --------------------------------------------------------------------------- #
def _choose_tile_b(B):
    # Single grid step for small/medium batches: per-step fixed overhead
    # (~0.35 us) dwarfs the per-step DMA, and the grid is a serial loop on
    # v5e/v6e.  For very large B, big lane tiles amortize that overhead;
    # multi-step tiles must be multiples of 128 (lane axis).
    if B <= 4096:
        return B
    for t in (8192, 4096, 2048, 1024, 512):
        if B % t == 0:
            return t
    return B  # single huge step; VMEM is not a constraint at these widths


def fully_connected_prediction(x, params, *, tile_b=None):
    B, F = x.shape
    P, d = fold_params(params)
    L = d["L"]

    if tile_b is None:
        tile_b = _choose_tile_b(B)
    assert B % tile_b == 0

    xT = x.T  # (F, B): batch on the 128-lane axis

    out_t = pl.pallas_call(
        functools.partial(fcp_kernel, **d),
        out_shape=jax.ShapeDtypeStruct((L, B), jnp.float32),
        grid_spec=pl.GridSpec(
            grid=(B // tile_b,),
            in_specs=[
                pl.BlockSpec((F, tile_b), lambda i: (0, i)),   # x.T tile over batch lanes
                pl.BlockSpec(P.shape, lambda i: (0, 0)),       # packed resident params
            ],
            out_specs=pl.BlockSpec((L, tile_b), lambda i: (0, i)),
        ),
        compiler_params=pltpu.CompilerParams(
            dimension_semantics=("parallel",)),
    )(xT, P)
    return out_t.T  # (B, L)


# --------------------------------------------------------------------------- #
# Parameter construction (mirrors the module's __init__) + pure-JAX reference
# --------------------------------------------------------------------------- #
def make_params(key, nfeatures, hidden_dim, nlabels):
    ks = jax.random.split(key, 6)

    def xavier(k, fan_in, fan_out, gain):
        limit = gain * jnp.sqrt(6.0 / (fan_in + fan_out))
        # stored as (in, out) = torch Linear weight (out, in) transposed
        return jax.random.uniform(k, (fan_in, fan_out), jnp.float32, -limit, limit)

    gain_lin = 1.0             # calculate_gain('linear')
    gain_relu = jnp.sqrt(2.0)  # calculate_gain('relu')

    w1 = xavier(ks[0], nfeatures, hidden_dim, gain_lin)
    b1 = jax.random.uniform(ks[1], (1, hidden_dim), jnp.float32, -0.1, 0.1)
    w2 = xavier(ks[2], hidden_dim, hidden_dim, gain_relu)
    b2 = jax.random.uniform(ks[3], (1, hidden_dim), jnp.float32, -0.1, 0.1)
    wp = xavier(ks[4], hidden_dim, nlabels, gain_relu)
    bp = jax.random.uniform(ks[5], (1, nlabels), jnp.float32, -0.1, 0.1)

    # BatchNorm1d at PyTorch defaults, eval mode:
    # scale = gamma / sqrt(var + eps), shift = beta - mean * scale.
    def bn_fold(dim):
        gamma = jnp.ones((1, dim), jnp.float32)
        beta = jnp.zeros((1, dim), jnp.float32)
        mean = jnp.zeros((1, dim), jnp.float32)
        var = jnp.ones((1, dim), jnp.float32)
        scale = gamma / jnp.sqrt(var + BN_EPS)
        shift = beta - mean * scale
        return scale, shift

    s1, t1 = bn_fold(hidden_dim)
    s2, t2 = bn_fold(hidden_dim)

    return dict(w1=w1, b1=b1, s1=s1, t1=t1,
                w2=w2, b2=b2, s2=s2, t2=t2,
                wp=wp, bp=bp)


def reference_forward(x, p):
    h = x @ p["w1"] + p["b1"]
    h = jnp.maximum(h * p["s1"] + p["t1"], 0.0)
    h = h @ p["w2"] + p["b2"]
    h = jnp.maximum(h * p["s2"] + p["t2"], 0.0)
    logits = h @ p["wp"] + p["bp"]
    return jax.nn.softmax(logits, axis=-1)


# --------------------------------------------------------------------------- #
if __name__ == "__main__":
    nfeatures, hidden_dim, nlabels = 32, 32, 8
    batch = 256  # -> tile_b = 256, a single grid step (overhead-optimal)

    key = jax.random.PRNGKey(0)
    kx, kp = jax.random.split(key)
    x = jax.random.normal(kx, (batch, nfeatures), jnp.float32)
    params = make_params(kp, nfeatures, hidden_dim, nlabels)

    out = fully_connected_prediction(x, params)
    out = jax.block_until_ready(out)

    ref = reference_forward(x, params)
    assert out.shape == (batch, nlabels)
    assert jnp.allclose(out, ref, atol=1e-5, rtol=1e-5), "mismatch vs reference"
    # rows of softmax output sum to 1
    assert jnp.allclose(jnp.sum(out, axis=-1), jnp.ones((batch,)), atol=1e-5)

    print("KERNEL_OK")
</pallas_src>

<mosaic_0001>
module attributes {stable_mosaic.version = 11 : i64} {
  func.func @fcp_kernel(%arg0: i32, %arg1: memref<32x256xf32, #tpu.memory_space<vmem>>, %arg2: memref<104x32xf32, #tpu.memory_space<vmem>>, %arg3: memref<8x256xf32, #tpu.memory_space<vmem>>) attributes {dimension_semantics = [#tpu.dimension_semantics<parallel>], iteration_bounds = array<i64: 1>, scalar_prefetch = 0 : i64, scratch_operands = 0 : i64, tpu.core_type = #tpu.core_type<tc>, window_params = [{transform_indices = @transform_0, window_bounds = array<i64: 32, 256>}, {pipeline_mode = #tpu.pipeline_mode<synchronous>, transform_indices = @transform_1, window_bounds = array<i64: 104, 32>}, {transform_indices = @transform_2, window_bounds = array<i64: 8, 256>}]} {
    %c0 = arith.constant 0 : index
    %c0_0 = arith.constant 0 : index
    %0 = vector.load %arg1[%c0, %c0_0] : memref<32x256xf32, #tpu.memory_space<vmem>>, vector<32x256xf32>
    %c0_1 = arith.constant 0 : index
    %c0_2 = arith.constant 0 : index
    %1 = vector.load %arg2[%c0_1, %c0_2] : memref<104x32xf32, #tpu.memory_space<vmem>>, vector<32x32xf32>
    %c32 = arith.constant 32 : index
    %c0_3 = arith.constant 0 : index
    %2 = vector.load %arg2[%c32, %c0_3] : memref<104x32xf32, #tpu.memory_space<vmem>>, vector<32x32xf32>
    %c64 = arith.constant 64 : index
    %c0_4 = arith.constant 0 : index
    %3 = vector.load %arg2[%c64, %c0_4] : memref<104x32xf32, #tpu.memory_space<vmem>>, vector<8x32xf32>
    %c72 = arith.constant 72 : index
    %c0_5 = arith.constant 0 : index
    %4 = vector.load %arg2[%c72, %c0_5] : memref<104x32xf32, #tpu.memory_space<vmem>>, vector<32x1xf32>
    %c72_6 = arith.constant 72 : index
    %c1 = arith.constant 1 : index
    %5 = vector.load %arg2[%c72_6, %c1] : memref<104x32xf32, #tpu.memory_space<vmem>>, vector<32x1xf32>
    %c72_7 = arith.constant 72 : index
    %c2 = arith.constant 2 : index
    %6 = vector.load %arg2[%c72_7, %c2] : memref<104x32xf32, #tpu.memory_space<vmem>>, vector<8x1xf32>
    %cst = arith.constant dense<0.000000e+00> : vector<32x256xf32>
    %7 = tpu.matmul %1, %0, %cst {dimension_numbers = #tpu.dot_dimension_numbers<[1], [0], [0], [1], [0, 0, 1, 1], [], []>} : vector<32x32xf32>, vector<32x256xf32>, vector<32x256xf32> -> vector<32x256xf32>
    %8 = vector.broadcast %4 : vector<32x1xf32> to vector<32x256xf32>
    %9 = arith.addf %7, %8 : vector<32x256xf32>
    %cst_8 = arith.constant 0.000000e+00 : f32
    %10 = vector.broadcast %cst_8 : f32 to vector<32x256xf32>
    %11 = arith.maximumf %9, %10 : vector<32x256xf32>
    %cst_9 = arith.constant dense<0.000000e+00> : vector<32x256xf32>
    %12 = tpu.matmul %2, %11, %cst_9 {dimension_numbers = #tpu.dot_dimension_numbers<[1], [0], [0], [1], [0, 0, 1, 1], [], []>} : vector<32x32xf32>, vector<32x256xf32>, vector<32x256xf32> -> vector<32x256xf32>
    %13 = vector.broadcast %5 : vector<32x1xf32> to vector<32x256xf32>
    %14 = arith.addf %12, %13 : vector<32x256xf32>
    %cst_10 = arith.constant 0.000000e+00 : f32
    %15 = vector.broadcast %cst_10 : f32 to vector<32x256xf32>
    %16 = arith.maximumf %14, %15 : vector<32x256xf32>
    %cst_11 = arith.constant dense<0.000000e+00> : vector<8x256xf32>
    %17 = tpu.matmul %3, %16, %cst_11 {dimension_numbers = #tpu.dot_dimension_numbers<[1], [0], [0], [1], [0, 0, 1, 1], [], []>} : vector<8x32xf32>, vector<32x256xf32>, vector<8x256xf32> -> vector<8x256xf32>
    %18 = vector.broadcast %6 : vector<8x1xf32> to vector<8x256xf32>
    %19 = arith.addf %17, %18 : vector<8x256xf32>
    %cst_12 = arith.constant dense<0xFF800000> : vector<256xf32>
    %20 = vector.multi_reduction <maximumf>, %19, %cst_12 [0] : vector<8x256xf32> to vector<256xf32>
    %21 = vector.shape_cast %20 : vector<256xf32> to vector<1x256xf32>
    %22 = vector.broadcast %21 : vector<1x256xf32> to vector<8x256xf32>
    %23 = arith.subf %19, %22 : vector<8x256xf32>
    %24 = math.exp %23 : vector<8x256xf32>
    %cst_13 = arith.constant dense<0.000000e+00> : vector<256xf32>
    %25 = vector.multi_reduction <add>, %24, %cst_13 [0] : vector<8x256xf32> to vector<256xf32>
    %26 = vector.shape_cast %25 : vector<256xf32> to vector<1x256xf32>
    %27 = tpu.reciprocal %26 : vector<1x256xf32> -> vector<1x256xf32>
    %28 = vector.broadcast %27 : vector<1x256xf32> to vector<8x256xf32>
    %29 = arith.mulf %24, %28 : vector<8x256xf32>
    %c0_14 = arith.constant 0 : index
    %c0_15 = arith.constant 0 : index
    %30 = vector.load %arg3[%c0_14, %c0_15] : memref<8x256xf32, #tpu.memory_space<vmem>>, vector<8x256xf32>
    tpu.vector_store %arg3[%c0_14, %c0_15], %29 {strides = array<i32>} : memref<8x256xf32, #tpu.memory_space<vmem>>, vector<8x256xf32>,
    return
  }
  func.func @transform_0(%arg0: i32) -> (i32, i32) {
    %c0_i32 = arith.constant 0 : i32
    %c0_i32_0 = arith.constant 0 : i32
    return %c0_i32, %arg0 : i32, i32
  }
  func.func @transform_1(%arg0: i32) -> (i32, i32) {
    %c0_i32 = arith.constant 0 : i32
    %c0_i32_0 = arith.constant 0 : i32
    %c0_i32_1 = arith.constant 0 : i32
    return %c0_i32, %c0_i32_0 : i32, i32
  }
  func.func @transform_2(%arg0: i32) -> (i32, i32) {
    %c0_i32 = arith.constant 0 : i32
    %c0_i32_0 = arith.constant 0 : i32
    return %c0_i32, %arg0 : i32, i32
  }
}

</mosaic_0001>

<bundles_post_ra>
// kernel: tpu_custom_call.1
= control target key start
LH: loop header
LB: loop body
LE: loop exit
PB: predicated region body
PF: predicated region fallthrough
CT: control target
= control target key end

     0   :  { %v466_v4 = vmov 0.0   ;;  %v467_v6 = vmov 0   ;;  %s575_s0 = inlined_call_operand.vmem [shape: f32[32,256], index: 0, kind: input, shape index: {}]   ;;  %s576_s1 = inlined_call_operand.vmem [shape: f32[104,32], index: 1, kind: input, shape index: {}]   ;;  %s577_s2 = inlined_call_operand.hbm [shape: f32[8,256], index: 2, kind: output, shape index: {}]  }
   0x1   :  { %v19_v0 = vld [vmem:[%s575_s0 + $0x38] sm:$0xff]  ;;  %v18_v1 = vld [vmem:[%s575_s0 + $0x30] sm:$0xff]  ;;  %v17_v2 = vld [vmem:[%s575_s0 + $0x28] sm:$0xff]  ;;  %130 = vmatprep.mubr.f32.mxu0 %v466_v4  ;;  %431 = vset.pattern.permute.xlu1 %v467_v6 }
   0x2   :  { %90 = vmatprep.subr.mxu0 %v19_v0  ;;  %v16_v3 = vld [vmem:[%s575_s0 + $0x20] sm:$0xff]  ;;  %v15_v5 = vld [vmem:[%s575_s0 + $0x18] sm:$0xff]  ;;  %v14_v7 = vld [vmem:[%s575_s0 + $0x10] sm:$0xff]  ;;  %430 = vset.pattern.permute.xlu0 %v467_v6 }
   0x3   :  { %91 = vmatpush1.msra.mxu0 %v18_v1  ;;  %v13_v8 = vld [vmem:[%s575_s0 + $0x8] sm:$0xff]  ;;  %v30_v9 = vld [vmem:[%s576_s1 + $0x50] sm:$0xff]  ;;  %v32_v10 = vld [vmem:[%s576_s1 + $0x60] sm:$0xff]  ;;  %255 = vmatprep.mubr.f32.mxu1 %v466_v4 }
   0x4   :  { %92 = vmatprep.subr.mxu0 %v17_v2  ;;  %v12_v11 = vld [vmem:[%s575_s0] sm:$0xff]  ;;  %40 = vperm.xlu1 %431, %v30_v9  }
   0x5   :  { %93 = vmatpush1.msra.mxu0 %v16_v3 }
   0x6   :  { %94 = vmatprep.subr.mxu0 %v15_v5 }
   0x7   :  { %7 = vsyncpa [#allocation3], 0  ;;  %95 = vmatpush1.msra.mxu0 %v14_v7  ;;  %v20_v12 = vld [vmem:[%s576_s1] sm:$0xff]  ;;  %vm53_vm0 = vcmask 261120   ;;  %v524_v13 = vld [vmem:[%s576_s1 + $0x48] sm:$0xff]  ;;  %50 = vperm.xlu0 %430, %v32_v10   ;;  %v468_v18 = vmov 1  }
   0x8   :  { %96 = vmatprep.subr.mxu0 %v13_v8  ;;  %v31_v14 = vld [vmem:[%s576_s1 + $0x58] sm:$0xff]  ;;  %35 = vperm.xlu1 %431, %v524_v13   ;;  %v21_v15 = vld [vmem:[%s576_s1 + $0x8] sm:$0xff]  ;;  %v22_v16 = vld [vmem:[%s576_s1 + $0x10] sm:$0xff]  ;;  %v469_v51 = vmov 2  }
   0x9   :  { %97 = vmatpush1.msra.mxu0 %v12_v11  ;;  %v23_v17 = vld [vmem:[%s576_s1 + $0x18] sm:$0xff]  ;;  %v24_v47 = vld [vmem:[%s576_s1 + $0x20] sm:$0xff]  ;;  %v25_v48 = vld [vmem:[%s576_s1 + $0x28] sm:$0xff] }
   0xa   :  { %416 = vmatmul.mubr.msk.f32.vlgmr.msra.gmra.mxu0 %vm53_vm0, %v20_v12  ;;  %v26_v49 = vld [vmem:[%s576_s1 + $0x30] sm:$0xff]  ;;  %v27_v50 = vld [vmem:[%s576_s1 + $0x38] sm:$0xff] }
   0xb   :  { %136 = vmatprep.mubr.f32.mxu0 %v466_v4  ;;  %45 = vperm.xlu0 %430, %v31_v14  }
   0xc   :  { %433 = vset.pattern.permute.xlu1 %v468_v18 }
   0xd   :  { %172 = vperm.xlu1 %433, %v31_v14  }
   0xe   :  { %417 = vmatmul.mubr.msk.f32.gmra.mxu0 %vm53_vm0, %v21_v15 }
   0xf   :  { %142 = vmatprep.mubr.f32.mxu0 %v466_v4  ;;  %432 = vset.pattern.permute.xlu0 %v468_v18 }
  0x10   :  { %176 = vperm.xlu0 %432, %v32_v10  }
  0x11   :  { %168 = vperm.xlu1 %433, %v30_v9  }
  0x12   :  { %418 = vmatmul.mubr.msk.f32.gmra.mxu0 %vm53_vm0, %v22_v16  ;;  %v28_v16 = vld [vmem:[%s576_s1 + $0x40] sm:$0xff]  ;;  %s470_s1 = smov [#allocation2]  }
  0x13   :  { %148 = vmatprep.mubr.f32.mxu0 %v466_v4  ;;  %s408_s22 = sshll.u32 %s470_s1, 4  ;;  %s409_s22 = int_to_ptr.vmem [resolvable:$true] %s408_s22 }
  0x14   :  { %164 = vperm.xlu0 %432, %v524_v13   ;;  %s444_s23 = scalar_lea.vmem %s409_s22, 256  ;;  %p449_p1 = scmp.lt.s32.totalorder %s409_s22, %s409_s22 }
  0x15   :  { %434 = vset.pattern.permute.xlu1 %v469_v51  ;;  %p445_p0 = scmp.ne.s32.totalorder %s409_s22, %s444_s23  ;;  %p450_p2 = scmp.lt.s32.totalorder %s444_s23, %s444_s23 }
  0x16   :  { %419 = vmatmul.mubr.msk.f32.gmra.mxu0 %vm53_vm0, %v23_v17  ;;  %289 = vperm.xlu1 %434, %v524_v13  }
  0x17   :  { %359 = vmatprep.mubr.f32.mxu0 %v466_v4  ;;  %p451_p3 = por %p450_p2, %p449_p1 }
  0x18   :  { %435 = vset.pattern.permute.xlu0 %v469_v51 }
  0x19   :  { %p452_p4 = pnand %p451_p3, %p445_p0 }
  0x7f   :  { %v41_v26 = vpop.permute.xlu1 %40 }
  0x82   :  { %v51_v23 = vpop.permute.xlu0 %50 }
  0x83   :  { %v36_v34 = vpop.permute.xlu1 %35 }
  0x86   :  { %v46_v28 = vpop.permute.xlu0 %45 }
  0x88   :  { %v173_v57 = vpop.permute.xlu1 %172 }
  0x8b   :  { %v177_v59 = vpop.permute.xlu0 %176 }
  0x8c   :  { %v169_v63 = vpop.permute.xlu1 %168 }
  0x8f   :  { %v165_v3 = vpop.permute.xlu0 %164 }
  0x91   :  { %v290_v17 = vpop.permute.xlu1 %289 }
  0xca   :  { %v132_v19 = vpop.f32.mrf.mxu0 }
  0xcb   :  { %v133_v41 = vadd.f32 %v132_v19, %v36_v34 }
  0xcc   :  { %v134_v20 = vpop.f32.mrf.mxu0 }
  0xcd   :  { %v135_v39 = vadd.f32 %v134_v20, %v36_v34  ;;  %v155_v46 = vmax.f32 %v133_v41, 0.0 }
  0xce   :  { %v138_v21 = vpop.f32.mrf.mxu0 }
  0xcf   :  { %v139_v37 = vadd.f32 %v138_v21, %v41_v26  ;;  %v156_v45 = vmax.f32 %v135_v39, 0.0 }
  0xd0   :  { %v140_v22 = vpop.f32.mrf.mxu0 }
  0xd1   :  { %v141_v35 = vadd.f32 %v140_v22, %v41_v26  ;;  %v157_v44 = vmax.f32 %v139_v37, 0.0 }
  0xd2   :  { %v144_v24 = vpop.f32.mrf.mxu0 }
  0xd3   :  { %v145_v33 = vadd.f32 %v144_v24, %v46_v28  ;;  %v158_v43 = vmax.f32 %v141_v35, 0.0 }
  0xd4   :  { %v146_v25 = vpop.f32.mrf.mxu0 }
  0xd5   :  { %v147_v31 = vadd.f32 %v146_v25, %v46_v28  ;;  %v159_v42 = vmax.f32 %v145_v33, 0.0 }
  0xd6   :  { %v150_v27 = vpop.f32.mrf.mxu0 }
  0xd7   :  { %v151_v29 = vadd.f32 %v150_v27, %v51_v23  ;;  %v160_v40 = vmax.f32 %v147_v31, 0.0 }
  0xd8   :  { %v152_v30 = vpop.f32.mrf.mxu0 }
  0xd9   :  { %v153_v32 = vadd.f32 %v152_v30, %v51_v23  ;;  %v161_v38 = vmax.f32 %v151_v29, 0.0 }
  0xdb   :  { %v162_v36 = vmax.f32 %v153_v32, 0.0 }
  0xdd   :  { %215 = vmatprep.subr.mxu1 %v162_v36 }
  0xde   :  { %216 = vmatpush1.msra.mxu1 %v161_v38 }
  0xdf   :  { %217 = vmatprep.subr.mxu1 %v160_v40 }
  0xe0   :  { %218 = vmatpush1.msra.mxu1 %v159_v42 }
  0xe1   :  { %219 = vmatprep.subr.mxu1 %v158_v43 }
  0xe2   :  { %220 = vmatpush1.msra.mxu1 %v157_v44 }
  0xe3   :  { %221 = vmatprep.subr.mxu1 %v156_v45 }
  0xe4   :  { %222 = vmatpush1.msra.mxu1 %v155_v46 }
  0xe5   :  { %420 = vmatmul.mubr.msk.f32.vlgmr.msra.gmra.mxu1 %vm53_vm0, %v24_v47 }
  0xe6   :  { %261 = vmatprep.mubr.f32.mxu1 %v466_v4 }
  0xe9   :  { %421 = vmatmul.mubr.msk.f32.gmra.mxu1 %vm53_vm0, %v25_v48 }
  0xea   :  { %267 = vmatprep.mubr.f32.mxu1 %v466_v4 }
  0xed   :  { %422 = vmatmul.mubr.msk.f32.gmra.mxu1 %vm53_vm0, %v26_v49 }
  0xee   :  { %273 = vmatprep.mubr.f32.mxu1 %v466_v4 }
  0xf1   :  { %423 = vmatmul.mubr.msk.f32.gmra.mxu1 %vm53_vm0, %v27_v50 }
 0x1a5   :  { %v257_v52 = vpop.f32.mrf.mxu1 }
 0x1a6   :  { %v258_v10 = vadd.f32 %v257_v52, %v165_v3 }
 0x1a7   :  { %v259_v53 = vpop.f32.mrf.mxu1 }
 0x1a8   :  { %v260_v8 = vadd.f32 %v259_v53, %v165_v3  ;;  %v280_v15 = vmax.f32 %v258_v10, 0.0 }
 0x1a9   :  { %v263_v54 = vpop.f32.mrf.mxu1 }
 0x1aa   :  { %v264_v6 = vadd.f32 %v263_v54, %v169_v63  ;;  %v281_v14 = vmax.f32 %v260_v8, 0.0 }
 0x1ab   :  { %v265_v55 = vpop.f32.mrf.mxu1 }
 0x1ac   :  { %v266_v4 = vadd.f32 %v265_v55, %v169_v63  ;;  %v282_v13 = vmax.f32 %v264_v6, 0.0 }
 0x1ad   :  { %v269_v56 = vpop.f32.mrf.mxu1 }
 0x1ae   :  { %v270_v2 = vadd.f32 %v269_v56, %v173_v57  ;;  %v283_v12 = vmax.f32 %v266_v4, 0.0 }
 0x1af   :  { %v271_v58 = vpop.f32.mrf.mxu1 }
 0x1b0   :  { %v272_v0 = vadd.f32 %v271_v58, %v173_v57  ;;  %v284_v11 = vmax.f32 %v270_v2, 0.0 }
 0x1b1   :  { %v275_v60 = vpop.f32.mrf.mxu1 }
 0x1b2   :  { %v276_v61 = vadd.f32 %v275_v60, %v177_v59  ;;  %v285_v9 = vmax.f32 %v272_v0, 0.0 }
 0x1b3   :  { %v277_v62 = vpop.f32.mrf.mxu1 }
 0x1b4   :  { %v278_v1 = vadd.f32 %v277_v62, %v177_v59  ;;  %v286_v7 = vmax.f32 %v276_v61, 0.0 }
 0x1b6   :  { %v287_v5 = vmax.f32 %v278_v1, 0.0 }
 0x1b8   :  { %319 = vmatprep.subr.mxu0 %v287_v5 }
 0x1b9   :  { %320 = vmatpush1.msra.mxu0 %v286_v7 }
 0x1ba   :  { %321 = vmatprep.subr.mxu0 %v285_v9 }
 0x1bb   :  { %322 = vmatpush1.msra.mxu0 %v284_v11 }
 0x1bc   :  { %323 = vmatprep.subr.mxu0 %v283_v12 }
 0x1bd   :  { %324 = vmatpush1.msra.mxu0 %v282_v13 }
 0x1be   :  { %325 = vmatprep.subr.mxu0 %v281_v14 }
 0x1bf   :  { %326 = vmatpush1.msra.mxu0 %v280_v15 }
 0x1c0   :  { %424 = vmatmul.mubr.msk.f32.vlgmr.msra.gmra.mxu0 %vm53_vm0, %v28_v16 }
 0x280   :  { %v361_v18 = vpop.f32.mrf.mxu0 }
 0x281   :  { %v362_v19 = vadd.f32 %v361_v18, %v290_v17 }
 0x282   :  { %v363_v20 = vpop.f32.mrf.mxu0 }
 0x283   :  { %v366_v21 = vrot.slane %v362_v19, 4  ;;  %v364_v22 = vadd.f32 %v363_v20, %v290_v17 }
 0x285   :  { %v367_v23 = vmax.f32 %v362_v19, %v366_v21  ;;  %v372_v24 = vrot.slane %v364_v22, 4 }
 0x287   :  { %v368_v25 = vrot.slane %v367_v23, 2  ;;  %v373_v26 = vmax.f32 %v364_v22, %v372_v24 }
 0x289   :  { %v369_v27 = vmax.f32 %v367_v23, %v368_v25  ;;  %v374_v28 = vrot.slane %v373_v26, 2 }
 0x28b   :  { %v370_v29 = vrot.slane %v369_v27, 1  ;;  %v375_v30 = vmax.f32 %v373_v26, %v374_v28 }
 0x28d   :  { %v371_v31 = vmax.f32 %v369_v27, %v370_v29  ;;  %v376_v32 = vrot.slane %v375_v30, 1 }
 0x28f   :  { %v378_v33 = vsub.f32 %v362_v19, %v371_v31  ;;  %v377_v34 = vmax.f32 %v375_v30, %v376_v32 }
 0x291   :  { %v380_v35 = vmul.f32 1.442695, %v378_v33  ;;  %v379_v36 = vsub.f32 %v364_v22, %v377_v34 }
 0x293   :  { %436 = vpow2.f32 %v380_v35  ;;  %v382_v37 = vmul.f32 1.442695, %v379_v36 }
 0x295   :  { %438 = vpow2.f32 %v382_v37 }
 0x2a0   :  { %v437_v38 = vpop.eup %436 }
 0x2a1   :  { %v384_v39 = vrot.slane %v437_v38, 4 }
 0x2a2   :  { %v439_v40 = vpop.eup %438 }
 0x2a3   :  { %v385_v41 = vadd.f32 %v437_v38, %v384_v39  ;;  %v390_v42 = vrot.slane %v439_v40, 4 }
 0x2a5   :  { %v386_v43 = vrot.slane %v385_v41, 2  ;;  %v391_v44 = vadd.f32 %v439_v40, %v390_v42 }
 0x2a7   :  { %v387_v45 = vadd.f32 %v386_v43, %v385_v41  ;;  %v392_v46 = vrot.slane %v391_v44, 2 }
 0x2a9   :  { %v388_v47 = vrot.slane %v387_v45, 1  ;;  %v393_v48 = vadd.f32 %v392_v46, %v391_v44 }
 0x2ab   :  { %v389_v49 = vadd.f32 %v388_v47, %v387_v45  ;;  %v394_v50 = vrot.slane %v393_v48, 1 }
 0x2ad   :  { %v395_v51 = vadd.f32 %v394_v50, %v393_v48  ;;  %440 = vrcp.f32 %v389_v49 }
 0x2af   :  { %442 = vrcp.f32 %v395_v51 }
 0x2ba   :  { %v441_v52 = vpop.eup %440 }
 0x2bb   :  { %v398_v53 = vmul.f32 %v441_v52, %v437_v38 }
 0x2bc   :  { %v443_v54 = vpop.eup %442 }
 0x2bd   :  { %v399_v55 = vmul.f32 %v443_v54, %v439_v40  ;;  %400 = vst [vmem:[#allocation2] sm:$0xff] %v398_v53 }
 0x2bf   :  { %401 = vst [vmem:[#allocation2 + $0x8] sm:$0xff] %v399_v55 }
 0x2c0   :  { %455 = shalt.err (!%p452_p4)
}
 0x2c1   :  { %411 = dma.vmem_to_hbm [thread:$0]  %s409_s22, 256, %s577_s2, [#allocation3]  }
 0x2c2   :  { %464 = dma.done.wait [#allocation3], 256  }
 0x2c3   :  { %465 = vsyncadd [#allocation3], 4294967040 }
 0x2c4   :  { %415 = vsyncpa [#allocation3], 1 }

</bundles_post_ra>
